<compile_context>
chip_gen: v7x
topology: tpu7x:2x2x1
jax: 0.10.0
libtpu: 0.0.40
codegen_flags: <defaults>
</compile_context>

<pallas_src>
import functools

import jax
import jax.numpy as jnp
from jax.experimental import pallas as pl
from jax.experimental.pallas import tpu as pltpu


def _round_up(n, m):
    return ((n + m - 1) // m) * m


def _vae_kernel(x_ref, eps_ref,
                w1_ref, b1_ref, w2_ref, b2_ref,
                wh_ref, bh_ref,
                wd1_ref, bd1_ref, wd2_ref, bd2_ref, wd3_ref, bd3_ref,
                recon_ref, mulv_ref, *, latent_pad):
    f32 = jnp.float32
    bf16 = jnp.bfloat16

    x = x_ref[...]                                                   # (tb, input_pad) bf16

    # ---- encoder: Linear -> ReLU -> Linear -> ReLU  (bf16 MXU, f32 accumulate)
    h = jnp.dot(x, w1_ref[...], preferred_element_type=f32) + b1_ref[...]
    h = jnp.maximum(h, 0.0)
    h = jnp.dot(h.astype(bf16), w2_ref[...], preferred_element_type=f32) + b2_ref[...]
    h = jnp.maximum(h, 0.0)

    # ---- fused latent heads: one (128, 2*latent_pad) matmul, split into mu | logvar
    mulv = jnp.dot(h.astype(bf16), wh_ref[...], preferred_element_type=f32) + bh_ref[...]
    mu = mulv[:, :latent_pad]
    logvar = mulv[:, latent_pad:]

    # ---- reparameterize: z = mu + eps * exp(0.5 * logvar)   (f32; padded eps lanes are 0)
    z = mu + eps_ref[...] * jnp.exp(0.5 * logvar)

    # ---- decoder: Linear -> ReLU -> Linear -> ReLU -> Linear -> Sigmoid
    d = jnp.dot(z.astype(bf16), wd1_ref[...], preferred_element_type=f32) + bd1_ref[...]
    d = jnp.maximum(d, 0.0)
    d = jnp.dot(d.astype(bf16), wd2_ref[...], preferred_element_type=f32) + bd2_ref[...]
    d = jnp.maximum(d, 0.0)
    logits = jnp.dot(d.astype(bf16), wd3_ref[...], preferred_element_type=f32) + bd3_ref[...]
    # sigmoid via EUP exp + approx reciprocal (keeps the widest tensor off the VPU divide)
    recon = pl.reciprocal(1.0 + jnp.exp(-logits), approx=True)

    recon_ref[...] = recon.astype(recon_ref.dtype)
    mulv_ref[...] = mulv.astype(mulv_ref.dtype)


def init_vae_params(key, input_dim, latent_dim=20):
    """Deterministic PyTorch-Linear-style init (uniform +/- 1/sqrt(fan_in)).
    Logical f32 weights stored already transposed to (in, out)."""
    dims = [
        ("w1", input_dim, 256), ("w2", 256, 128),
        ("wmu", 128, latent_dim), ("wlv", 128, latent_dim),
        ("wd1", latent_dim, 128), ("wd2", 128, 256), ("wd3", 256, input_dim),
    ]
    params = {}
    for name, fan_in, fan_out in dims:
        key, kw, kb = jax.random.split(key, 3)
        bound = 1.0 / jnp.sqrt(float(fan_in))
        params[name] = jax.random.uniform(
            kw, (fan_in, fan_out), jnp.float32, -bound, bound)
        params[name.replace("w", "b", 1)] = jax.random.uniform(
            kb, (1, fan_out), jnp.float32, -bound, bound)
    return params


def prepare_vae_params(params, input_dim, latent_dim):
    """Zero-pad input/latent dims to 128 lanes, fuse mu|logvar head, cast weights to bf16."""
    input_pad = _round_up(input_dim, 128)
    latent_pad = _round_up(latent_dim, 128)

    def pad_w(w, rows, cols):
        out = jnp.zeros((rows, cols), jnp.float32).at[:w.shape[0], :w.shape[1]].set(w)
        return out.astype(jnp.bfloat16)

    def pad_b(b, cols):
        return jnp.zeros((1, cols), jnp.float32).at[:, :b.shape[1]].set(b)

    kp = {
        "w1": pad_w(params["w1"], input_pad, 256),   "b1": pad_b(params["b1"], 256),
        "w2": pad_w(params["w2"], 256, 128),         "b2": pad_b(params["b2"], 128),
        "wd1": pad_w(params["wd1"], latent_pad, 128), "bd1": pad_b(params["bd1"], 128),
        "wd2": pad_w(params["wd2"], 128, 256),       "bd2": pad_b(params["bd2"], 256),
        "wd3": pad_w(params["wd3"], 256, input_pad), "bd3": pad_b(params["bd3"], input_pad),
    }
    # Fused latent head: cols [0, latent_pad) = mu, [latent_pad, 2*latent_pad) = logvar.
    wh = jnp.zeros((128, 2 * latent_pad), jnp.float32)
    wh = wh.at[:, :latent_dim].set(params["wmu"])
    wh = wh.at[:, latent_pad:latent_pad + latent_dim].set(params["wlv"])
    bh = jnp.zeros((1, 2 * latent_pad), jnp.float32)
    bh = bh.at[:, :latent_dim].set(params["bmu"])
    bh = bh.at[:, latent_pad:latent_pad + latent_dim].set(params["blv"])
    kp["wh"] = wh.astype(jnp.bfloat16)
    kp["bh"] = bh
    return kp


@functools.partial(jax.jit, static_argnames=("input_dim", "latent_dim", "block_b"))
def vae_forward(x, eps, kp, *, input_dim, latent_dim, block_b=512):
    B = x.shape[0]
    input_pad = kp["w1"].shape[0]
    latent_pad = kp["wd1"].shape[0]

    # batch tile: big blocks for streaming efficiency, but never larger than needed
    tb = block_b if B >= block_b else _round_up(max(B, 8), 8)
    B_pad = _round_up(B, tb)
    grid = (B_pad // tb,)

    # pad streamed inputs (x in bf16 halves HBM traffic; eps stays f32 for elementwise)
    x_p = jnp.zeros((B_pad, input_pad), jnp.bfloat16).at[:B, :input_dim].set(
        x.astype(jnp.bfloat16))
    eps_p = jnp.zeros((B_pad, latent_pad), jnp.float32).at[:B, :latent_dim].set(eps)

    def stream(shape):      # streamed over the batch grid
        return pl.BlockSpec(shape, lambda i: (i, 0))

    def resident(arr):      # constant index_map -> stays VMEM-resident across steps
        return pl.BlockSpec(arr.shape, lambda i: (0, 0))

    in_specs = [
        stream((tb, input_pad)),          # x
        stream((tb, latent_pad)),         # eps
        resident(kp["w1"]), resident(kp["b1"]),
        resident(kp["w2"]), resident(kp["b2"]),
        resident(kp["wh"]), resident(kp["bh"]),
        resident(kp["wd1"]), resident(kp["bd1"]),
        resident(kp["wd2"]), resident(kp["bd2"]),
        resident(kp["wd3"]), resident(kp["bd3"]),
    ]
    out_specs = (
        stream((tb, input_pad)),          # recon (padded)
        stream((tb, 2 * latent_pad)),     # mu | logvar (padded, lane-dense)
    )

    recon_p, mulv = pl.pallas_call(
        functools.partial(_vae_kernel, latent_pad=latent_pad),
        grid=grid,
        in_specs=in_specs,
        out_specs=out_specs,
        out_shape=(
            jax.ShapeDtypeStruct((B_pad, input_pad), jnp.float32),
            jax.ShapeDtypeStruct((B_pad, 2 * latent_pad), jnp.float32),
        ),
        compiler_params=pltpu.CompilerParams(
            dimension_semantics=("parallel",),   # megacore sharding on v7x; harmless on 1-TC chips
        ),
    )(x_p, eps_p,
      kp["w1"], kp["b1"], kp["w2"], kp["b2"],
      kp["wh"], kp["bh"],
      kp["wd1"], kp["bd1"], kp["wd2"], kp["bd2"], kp["wd3"], kp["bd3"])

    recon = recon_p[:B, :input_dim]
    mu = mulv[:B, :latent_dim]
    logvar = mulv[:B, latent_pad:latent_pad + latent_dim]
    return recon, mu, logvar


def vae_forward_ref(x, eps, params):
    """Pure-JAX f32 reference for correctness checking."""
    h = jnp.maximum(x @ params["w1"] + params["b1"], 0.0)
    h = jnp.maximum(h @ params["w2"] + params["b2"], 0.0)
    mu = h @ params["wmu"] + params["bmu"]
    logvar = h @ params["wlv"] + params["blv"]
    z = mu + eps * jnp.exp(0.5 * logvar)
    d = jnp.maximum(z @ params["wd1"] + params["bd1"], 0.0)
    d = jnp.maximum(d @ params["wd2"] + params["bd2"], 0.0)
    recon = jax.nn.sigmoid(d @ params["wd3"] + params["bd3"])
    return recon, mu, logvar


if __name__ == "__main__":
    key = jax.random.PRNGKey(0)
    k_params, k_x, k_eps, k_x2, k_eps2 = jax.random.split(key, 5)

    B, INPUT_DIM, LATENT_DIM = 8, 64, 20
    params = init_vae_params(k_params, INPUT_DIM, LATENT_DIM)
    kparams = prepare_vae_params(params, INPUT_DIM, LATENT_DIM)

    # bf16 matmul operands => looser tolerance vs the f32 reference
    ATOL = RTOL = 3e-2

    # --- small batch (single grid step)
    x = jax.random.uniform(k_x, (B, INPUT_DIM), jnp.float32)          # "image" features in [0,1]
    eps = jax.random.normal(k_eps, (B, LATENT_DIM), jnp.float32)      # torch.randn_like drawn outside
    recon, mu, logvar = vae_forward(x, eps, kparams,
                                    input_dim=INPUT_DIM, latent_dim=LATENT_DIM)
    jax.block_until_ready((recon, mu, logvar))

    r_ref, m_ref, lv_ref = vae_forward_ref(x, eps, params)
    assert recon.shape == (B, INPUT_DIM)
    assert mu.shape == (B, LATENT_DIM) and logvar.shape == (B, LATENT_DIM)
    assert jnp.allclose(recon, r_ref, atol=ATOL, rtol=RTOL)
    assert jnp.allclose(mu, m_ref, atol=ATOL, rtol=RTOL)
    assert jnp.allclose(logvar, lv_ref, atol=ATOL, rtol=RTOL)

    # --- ragged batch with multi-step grid (exercises batch tiling + padding path)
    B2 = 50
    x2 = jax.random.uniform(k_x2, (B2, INPUT_DIM), jnp.float32)
    eps2 = jax.random.normal(k_eps2, (B2, LATENT_DIM), jnp.float32)
    recon2, mu2, logvar2 = vae_forward(x2, eps2, kparams,
                                       input_dim=INPUT_DIM, latent_dim=LATENT_DIM,
                                       block_b=16)
    jax.block_until_ready((recon2, mu2, logvar2))
    r2, m2, lv2 = vae_forward_ref(x2, eps2, params)
    assert recon2.shape == (B2, INPUT_DIM)
    assert jnp.allclose(recon2, r2, atol=ATOL, rtol=RTOL)
    assert jnp.allclose(mu2, m2, atol=ATOL, rtol=RTOL)
    assert jnp.allclose(logvar2, lv2, atol=ATOL, rtol=RTOL)

    print("KERNEL_OK")
</pallas_src>

<mosaic_0001>
module attributes {stable_mosaic.version = 11 : i64} {
  func.func @_vae_kernel(%arg0: i32, %arg1: memref<8x128xbf16, #tpu.memory_space<vmem>>, %arg2: memref<8x128xf32, #tpu.memory_space<vmem>>, %arg3: memref<128x256xbf16, #tpu.memory_space<vmem>>, %arg4: memref<1x256xf32, #tpu.memory_space<vmem>>, %arg5: memref<256x128xbf16, #tpu.memory_space<vmem>>, %arg6: memref<1x128xf32, #tpu.memory_space<vmem>>, %arg7: memref<128x256xbf16, #tpu.memory_space<vmem>>, %arg8: memref<1x256xf32, #tpu.memory_space<vmem>>, %arg9: memref<128x128xbf16, #tpu.memory_space<vmem>>, %arg10: memref<1x128xf32, #tpu.memory_space<vmem>>, %arg11: memref<128x256xbf16, #tpu.memory_space<vmem>>, %arg12: memref<1x256xf32, #tpu.memory_space<vmem>>, %arg13: memref<256x128xbf16, #tpu.memory_space<vmem>>, %arg14: memref<1x128xf32, #tpu.memory_space<vmem>>, %arg15: memref<8x128xf32, #tpu.memory_space<vmem>>, %arg16: memref<8x256xf32, #tpu.memory_space<vmem>>) attributes {dimension_semantics = [#tpu.dimension_semantics<parallel>], iteration_bounds = array<i64: 1>, scalar_prefetch = 0 : i64, scratch_operands = 0 : i64, tpu.core_type = #tpu.core_type<tc>, window_params = [{transform_indices = @transform_0, window_bounds = array<i64: 8, 128>}, {transform_indices = @transform_1, window_bounds = array<i64: 8, 128>}, {pipeline_mode = #tpu.pipeline_mode<synchronous>, transform_indices = @transform_2, window_bounds = array<i64: 128, 256>}, {pipeline_mode = #tpu.pipeline_mode<synchronous>, transform_indices = @transform_3, window_bounds = array<i64: 1, 256>}, {pipeline_mode = #tpu.pipeline_mode<synchronous>, transform_indices = @transform_4, window_bounds = array<i64: 256, 128>}, {pipeline_mode = #tpu.pipeline_mode<synchronous>, transform_indices = @transform_5, window_bounds = array<i64: 1, 128>}, {pipeline_mode = #tpu.pipeline_mode<synchronous>, transform_indices = @transform_6, window_bounds = array<i64: 128, 256>}, {pipeline_mode = #tpu.pipeline_mode<synchronous>, transform_indices = @transform_7, window_bounds = array<i64: 1, 256>}, {pipeline_mode = #tpu.pipeline_mode<synchronous>, transform_indices = @transform_8, window_bounds = array<i64: 128, 128>}, {pipeline_mode = #tpu.pipeline_mode<synchronous>, transform_indices = @transform_9, window_bounds = array<i64: 1, 128>}, {pipeline_mode = #tpu.pipeline_mode<synchronous>, transform_indices = @transform_10, window_bounds = array<i64: 128, 256>}, {pipeline_mode = #tpu.pipeline_mode<synchronous>, transform_indices = @transform_11, window_bounds = array<i64: 1, 256>}, {pipeline_mode = #tpu.pipeline_mode<synchronous>, transform_indices = @transform_12, window_bounds = array<i64: 256, 128>}, {pipeline_mode = #tpu.pipeline_mode<synchronous>, transform_indices = @transform_13, window_bounds = array<i64: 1, 128>}, {transform_indices = @transform_14, window_bounds = array<i64: 8, 128>}, {transform_indices = @transform_15, window_bounds = array<i64: 8, 256>}]} {
    %c0 = arith.constant 0 : index
    %c0_0 = arith.constant 0 : index
    %0 = vector.load %arg1[%c0, %c0_0] : memref<8x128xbf16, #tpu.memory_space<vmem>>, vector<8x128xbf16>
    %c0_1 = arith.constant 0 : index
    %c0_2 = arith.constant 0 : index
    %1 = vector.load %arg3[%c0_1, %c0_2] : memref<128x256xbf16, #tpu.memory_space<vmem>>, vector<128x256xbf16>
    %cst = arith.constant dense<0.000000e+00> : vector<8x256xf32>
    %2 = tpu.matmul %0, %1, %cst {dimension_numbers = #tpu.dot_dimension_numbers<[1], [0], [0], [1], [0, 0, 1, 1], [], []>} : vector<8x128xbf16>, vector<128x256xbf16>, vector<8x256xf32> -> vector<8x256xf32>
    %c0_3 = arith.constant 0 : index
    %c0_4 = arith.constant 0 : index
    %3 = vector.load %arg4[%c0_3, %c0_4] : memref<1x256xf32, #tpu.memory_space<vmem>>, vector<1x256xf32>
    %4 = vector.broadcast %3 : vector<1x256xf32> to vector<8x256xf32>
    %5 = arith.addf %2, %4 : vector<8x256xf32>
    %cst_5 = arith.constant 0.000000e+00 : f32
    %6 = vector.broadcast %cst_5 : f32 to vector<8x256xf32>
    %7 = arith.maximumf %5, %6 : vector<8x256xf32>
    %8 = arith.truncf %7 : vector<8x256xf32> to vector<8x256xbf16>
    %c0_6 = arith.constant 0 : index
    %c0_7 = arith.constant 0 : index
    %9 = vector.load %arg5[%c0_6, %c0_7] : memref<256x128xbf16, #tpu.memory_space<vmem>>, vector<256x128xbf16>
    %cst_8 = arith.constant dense<0.000000e+00> : vector<8x128xf32>
    %10 = tpu.matmul %8, %9, %cst_8 {dimension_numbers = #tpu.dot_dimension_numbers<[1], [0], [0], [1], [0, 0, 1, 1], [], []>} : vector<8x256xbf16>, vector<256x128xbf16>, vector<8x128xf32> -> vector<8x128xf32>
    %c0_9 = arith.constant 0 : index
    %c0_10 = arith.constant 0 : index
    %11 = vector.load %arg6[%c0_9, %c0_10] : memref<1x128xf32, #tpu.memory_space<vmem>>, vector<1x128xf32>
    %12 = vector.broadcast %11 : vector<1x128xf32> to vector<8x128xf32>
    %13 = arith.addf %10, %12 : vector<8x128xf32>
    %cst_11 = arith.constant 0.000000e+00 : f32
    %14 = vector.broadcast %cst_11 : f32 to vector<8x128xf32>
    %15 = arith.maximumf %13, %14 : vector<8x128xf32>
    %16 = arith.truncf %15 : vector<8x128xf32> to vector<8x128xbf16>
    %c0_12 = arith.constant 0 : index
    %c0_13 = arith.constant 0 : index
    %17 = vector.load %arg7[%c0_12, %c0_13] : memref<128x256xbf16, #tpu.memory_space<vmem>>, vector<128x256xbf16>
    %cst_14 = arith.constant dense<0.000000e+00> : vector<8x256xf32>
    %18 = tpu.matmul %16, %17, %cst_14 {dimension_numbers = #tpu.dot_dimension_numbers<[1], [0], [0], [1], [0, 0, 1, 1], [], []>} : vector<8x128xbf16>, vector<128x256xbf16>, vector<8x256xf32> -> vector<8x256xf32>
    %c0_15 = arith.constant 0 : index
    %c0_16 = arith.constant 0 : index
    %19 = vector.load %arg8[%c0_15, %c0_16] : memref<1x256xf32, #tpu.memory_space<vmem>>, vector<1x256xf32>
    %20 = vector.broadcast %19 : vector<1x256xf32> to vector<8x256xf32>
    %21 = arith.addf %18, %20 : vector<8x256xf32>
    %22 = vector.extract_strided_slice %21 {offsets = [0, 0], sizes = [8, 128], strides = [1, 1]} : vector<8x256xf32> to vector<8x128xf32>
    %23 = vector.extract_strided_slice %21 {offsets = [0, 128], sizes = [8, 128], strides = [1, 1]} : vector<8x256xf32> to vector<8x128xf32>
    %c0_17 = arith.constant 0 : index
    %c0_18 = arith.constant 0 : index
    %24 = vector.load %arg2[%c0_17, %c0_18] : memref<8x128xf32, #tpu.memory_space<vmem>>, vector<8x128xf32>
    %cst_19 = arith.constant 5.000000e-01 : f32
    %25 = vector.broadcast %cst_19 : f32 to vector<8x128xf32>
    %26 = arith.mulf %25, %23 : vector<8x128xf32>
    %27 = math.exp %26 : vector<8x128xf32>
    %28 = arith.mulf %24, %27 : vector<8x128xf32>
    %29 = arith.addf %22, %28 : vector<8x128xf32>
    %30 = arith.truncf %29 : vector<8x128xf32> to vector<8x128xbf16>
    %c0_20 = arith.constant 0 : index
    %c0_21 = arith.constant 0 : index
    %31 = vector.load %arg9[%c0_20, %c0_21] : memref<128x128xbf16, #tpu.memory_space<vmem>>, vector<128x128xbf16>
    %cst_22 = arith.constant dense<0.000000e+00> : vector<8x128xf32>
    %32 = tpu.matmul %30, %31, %cst_22 {dimension_numbers = #tpu.dot_dimension_numbers<[1], [0], [0], [1], [0, 0, 1, 1], [], []>} : vector<8x128xbf16>, vector<128x128xbf16>, vector<8x128xf32> -> vector<8x128xf32>
    %c0_23 = arith.constant 0 : index
    %c0_24 = arith.constant 0 : index
    %33 = vector.load %arg10[%c0_23, %c0_24] : memref<1x128xf32, #tpu.memory_space<vmem>>, vector<1x128xf32>
    %34 = vector.broadcast %33 : vector<1x128xf32> to vector<8x128xf32>
    %35 = arith.addf %32, %34 : vector<8x128xf32>
    %cst_25 = arith.constant 0.000000e+00 : f32
    %36 = vector.broadcast %cst_25 : f32 to vector<8x128xf32>
    %37 = arith.maximumf %35, %36 : vector<8x128xf32>
    %38 = arith.truncf %37 : vector<8x128xf32> to vector<8x128xbf16>
    %c0_26 = arith.constant 0 : index
    %c0_27 = arith.constant 0 : index
    %39 = vector.load %arg11[%c0_26, %c0_27] : memref<128x256xbf16, #tpu.memory_space<vmem>>, vector<128x256xbf16>
    %cst_28 = arith.constant dense<0.000000e+00> : vector<8x256xf32>
    %40 = tpu.matmul %38, %39, %cst_28 {dimension_numbers = #tpu.dot_dimension_numbers<[1], [0], [0], [1], [0, 0, 1, 1], [], []>} : vector<8x128xbf16>, vector<128x256xbf16>, vector<8x256xf32> -> vector<8x256xf32>
    %c0_29 = arith.constant 0 : index
    %c0_30 = arith.constant 0 : index
    %41 = vector.load %arg12[%c0_29, %c0_30] : memref<1x256xf32, #tpu.memory_space<vmem>>, vector<1x256xf32>
    %42 = vector.broadcast %41 : vector<1x256xf32> to vector<8x256xf32>
    %43 = arith.addf %40, %42 : vector<8x256xf32>
    %cst_31 = arith.constant 0.000000e+00 : f32
    %44 = vector.broadcast %cst_31 : f32 to vector<8x256xf32>
    %45 = arith.maximumf %43, %44 : vector<8x256xf32>
    %46 = arith.truncf %45 : vector<8x256xf32> to vector<8x256xbf16>
    %c0_32 = arith.constant 0 : index
    %c0_33 = arith.constant 0 : index
    %47 = vector.load %arg13[%c0_32, %c0_33] : memref<256x128xbf16, #tpu.memory_space<vmem>>, vector<256x128xbf16>
    %cst_34 = arith.constant dense<0.000000e+00> : vector<8x128xf32>
    %48 = tpu.matmul %46, %47, %cst_34 {dimension_numbers = #tpu.dot_dimension_numbers<[1], [0], [0], [1], [0, 0, 1, 1], [], []>} : vector<8x256xbf16>, vector<256x128xbf16>, vector<8x128xf32> -> vector<8x128xf32>
    %c0_35 = arith.constant 0 : index
    %c0_36 = arith.constant 0 : index
    %49 = vector.load %arg14[%c0_35, %c0_36] : memref<1x128xf32, #tpu.memory_space<vmem>>, vector<1x128xf32>
    %50 = vector.broadcast %49 : vector<1x128xf32> to vector<8x128xf32>
    %51 = arith.addf %48, %50 : vector<8x128xf32>
    %cst_37 = arith.constant 0.000000e+00 : f32
    %52 = vector.broadcast %cst_37 : f32 to vector<8x128xf32>
    %53 = arith.subf %52, %51 : vector<8x128xf32>
    %54 = math.exp %53 : vector<8x128xf32>
    %cst_38 = arith.constant 1.000000e+00 : f32
    %55 = vector.broadcast %cst_38 : f32 to vector<8x128xf32>
    %56 = arith.addf %55, %54 : vector<8x128xf32>
    %57 = tpu.reciprocal %56 {approx = true} : vector<8x128xf32> -> vector<8x128xf32>
    %c0_39 = arith.constant 0 : index
    %c0_40 = arith.constant 0 : index
    %58 = vector.load %arg15[%c0_39, %c0_40] : memref<8x128xf32, #tpu.memory_space<vmem>>, vector<8x128xf32>
    tpu.vector_store %arg15[%c0_39, %c0_40], %57 {strides = array<i32>} : memref<8x128xf32, #tpu.memory_space<vmem>>, vector<8x128xf32>,
    %c0_41 = arith.constant 0 : index
    %c0_42 = arith.constant 0 : index
    %59 = vector.load %arg16[%c0_41, %c0_42] : memref<8x256xf32, #tpu.memory_space<vmem>>, vector<8x256xf32>
    tpu.vector_store %arg16[%c0_41, %c0_42], %21 {strides = array<i32>} : memref<8x256xf32, #tpu.memory_space<vmem>>, vector<8x256xf32>,
    return
  }
  func.func @transform_0(%arg0: i32) -> (i32, i32) {
    %c0_i32 = arith.constant 0 : i32
    %c0_i32_0 = arith.constant 0 : i32
    return %arg0, %c0_i32 : i32, i32
  }
  func.func @transform_1(%arg0: i32) -> (i32, i32) {
    %c0_i32 = arith.constant 0 : i32
    %c0_i32_0 = arith.constant 0 : i32
    return %arg0, %c0_i32 : i32, i32
  }
  func.func @transform_2(%arg0: i32) -> (i32, i32) {
    %c0_i32 = arith.constant 0 : i32
    %c0_i32_0 = arith.constant 0 : i32
    %c0_i32_1 = arith.constant 0 : i32
    return %c0_i32, %c0_i32_0 : i32, i32
  }
  func.func @transform_3(%arg0: i32) -> (i32, i32) {
    %c0_i32 = arith.constant 0 : i32
    %c0_i32_0 = arith.constant 0 : i32
    %c0_i32_1 = arith.constant 0 : i32
    return %c0_i32, %c0_i32_0 : i32, i32
  }
  func.func @transform_4(%arg0: i32) -> (i32, i32) {
    %c0_i32 = arith.constant 0 : i32
    %c0_i32_0 = arith.constant 0 : i32
    %c0_i32_1 = arith.constant 0 : i32
    return %c0_i32, %c0_i32_0 : i32, i32
  }
  func.func @transform_5(%arg0: i32) -> (i32, i32) {
    %c0_i32 = arith.constant 0 : i32
    %c0_i32_0 = arith.constant 0 : i32
    %c0_i32_1 = arith.constant 0 : i32
    return %c0_i32, %c0_i32_0 : i32, i32
  }
  func.func @transform_6(%arg0: i32) -> (i32, i32) {
    %c0_i32 = arith.constant 0 : i32
    %c0_i32_0 = arith.constant 0 : i32
    %c0_i32_1 = arith.constant 0 : i32
    return %c0_i32, %c0_i32_0 : i32, i32
  }
  func.func @transform_7(%arg0: i32) -> (i32, i32) {
    %c0_i32 = arith.constant 0 : i32
    %c0_i32_0 = arith.constant 0 : i32
    %c0_i32_1 = arith.constant 0 : i32
    return %c0_i32, %c0_i32_0 : i32, i32
  }
  func.func @transform_8(%arg0: i32) -> (i32, i32) {
    %c0_i32 = arith.constant 0 : i32
    %c0_i32_0 = arith.constant 0 : i32
    %c0_i32_1 = arith.constant 0 : i32
    return %c0_i32, %c0_i32_0 : i32, i32
  }
  func.func @transform_9(%arg0: i32) -> (i32, i32) {
    %c0_i32 = arith.constant 0 : i32
    %c0_i32_0 = arith.constant 0 : i32
    %c0_i32_1 = arith.constant 0 : i32
    return %c0_i32, %c0_i32_0 : i32, i32
  }
  func.func @transform_10(%arg0: i32) -> (i32, i32) {
    %c0_i32 = arith.constant 0 : i32
    %c0_i32_0 = arith.constant 0 : i32
    %c0_i32_1 = arith.constant 0 : i32
    return %c0_i32, %c0_i32_0 : i32, i32
  }
  func.func @transform_11(%arg0: i32) -> (i32, i32) {
    %c0_i32 = arith.constant 0 : i32
    %c0_i32_0 = arith.constant 0 : i32
    %c0_i32_1 = arith.constant 0 : i32
    return %c0_i32, %c0_i32_0 : i32, i32
  }
  func.func @transform_12(%arg0: i32) -> (i32, i32) {
    %c0_i32 = arith.constant 0 : i32
    %c0_i32_0 = arith.constant 0 : i32
    %c0_i32_1 = arith.constant 0 : i32
    return %c0_i32, %c0_i32_0 : i32, i32
  }
  func.func @transform_13(%arg0: i32) -> (i32, i32) {
    %c0_i32 = arith.constant 0 : i32
    %c0_i32_0 = arith.constant 0 : i32
    %c0_i32_1 = arith.constant 0 : i32
    return %c0_i32, %c0_i32_0 : i32, i32
  }
  func.func @transform_14(%arg0: i32) -> (i32, i32) {
    %c0_i32 = arith.constant 0 : i32
    %c0_i32_0 = arith.constant 0 : i32
    return %arg0, %c0_i32 : i32, i32
  }
  func.func @transform_15(%arg0: i32) -> (i32, i32) {
    %c0_i32 = arith.constant 0 : i32
    %c0_i32_0 = arith.constant 0 : i32
    return %arg0, %c0_i32 : i32, i32
  }
}

</mosaic_0001>

<bundles_post_ra>
// kernel: vae_forward.1
= control target key start
LH: loop header
LB: loop body
LE: loop exit
PB: predicated region body
PF: predicated region fallthrough
CT: control target
= control target key end

     0   :  { %s1758_s0 = inlined_call_operand.vmem [shape: bf16[8,128], index: 0, kind: input, shape index: {}]   ;;  %s1759_s1 = inlined_call_operand.vmem [shape: f32[8,128], index: 1, kind: input, shape index: {}]   ;;  %s1760_s2 = inlined_call_operand.hbm [shape: bf16[128,256], index: 2, kind: input, shape index: {}]   ;;  %s1761_s3 = inlined_call_operand.vmem [shape: f32[1,256], index: 3, kind: input, shape index: {}]   ;;  %s1762_s4 = inlined_call_operand.hbm [shape: bf16[256,128], index: 4, kind: input, shape index: {}]   ;;  %s1763_s5 = inlined_call_operand.vmem [shape: f32[1,128], index: 5, kind: input, shape index: {}]   ;;  %s1764_s6 = inlined_call_operand.hbm [shape: bf16[128,256], index: 6, kind: input, shape index: {}]   ;;  %s1765_s7 = inlined_call_operand.vmem [shape: f32[1,256], index: 7, kind: input, shape index: {}]   ;;  %s1766_s8 = inlined_call_operand.vmem [shape: bf16[128,128], index: 8, kind: input, shape index: {}]   ;;  %s1767_s9 = inlined_call_operand.vmem [shape: f32[1,128], index: 9, kind: input, shape index: {}]   ;;  %s1768_s10 = inlined_call_operand.hbm [shape: bf16[128,256], index: 10, kind: input, shape index: {}]   ;;  %s1769_s11 = inlined_call_operand.vmem [shape: f32[1,256], index: 11, kind: input, shape index: {}]   ;;  %s1770_s12 = inlined_call_operand.hbm [shape: bf16[256,128], index: 12, kind: input, shape index: {}]   ;;  %s1771_s13 = inlined_call_operand.vmem [shape: f32[1,128], index: 13, kind: input, shape index: {}]   ;;  %s1772_s14 = inlined_call_operand.hbm [shape: f32[8,128], index: 14, kind: output, shape index: {0}]   ;;  %s1773_s15 = inlined_call_operand.vmem [shape: f32[8,256], index: 15, kind: output, shape index: {1}]  }
   0x1   :  { %1775 = sst [smem:[#allocation16_spill]] %s1772_s14 }
   0x2   :  { %21 = vsyncpa [#allocation3], 0 }
   0x3   :  { %22 = vsyncpa [#allocation6], 0 }
   0x4   :  { %23 = vsyncpa [#allocation9], 0 }
   0x5   :  { %24 = vsyncpa [#allocation4], 0  ;;  %s1511_s18 = smov [#allocation5]   ;;  %s1371_s22 = scalar_lea.hbm %s1762_s4, 2048 }
   0x6   :  { %s48_s19 = sshll.u32 %s1511_s18, 4  ;;  %p1372_p0 = scmp.ne.s32.totalorder %s1762_s4, %s1371_s22  ;;  %s49_s19 = int_to_ptr.vmem [resolvable:$true] %s48_s19 }
   0x7   :  { %p1375_p1 = scmp.lt.u32.totalorder %s1371_s22, %s1762_s4 }
   0x9   :  { %p1377_p2 = pnand %p1375_p1, %p1372_p0 }
   0xb   :  { %1380 = shalt.err (!%p1377_p2)
}
   0xc   :  { %s1381_s27 = scalar_lea.vmem %s49_s19, 2048  ;;  %p1386_p4 = scmp.lt.s32.totalorder %s49_s19, %s49_s19 }
   0xd   :  { %p1382_p3 = scmp.ne.s32.totalorder %s49_s19, %s1381_s27  ;;  %p1387_p5 = scmp.lt.s32.totalorder %s1381_s27, %s1381_s27 }
   0xf   :  { %p1388_p6 = por %p1387_p5, %p1386_p4 }
  0x11   :  { %p1389_p7 = pnand %p1388_p6, %p1382_p3 }
  0x13   :  { %1392 = shalt.err (!%p1389_p7)
}
  0x14   :  { %s1512_s28 = smov 64   ;;  %s1513_s29 = smov 4  }
  0x15   :  { %54 = dma.hbm_to_vmem [thread:$0]  %s1762_s4, 2048, %s49_s19, [#allocation6], %s1512_s28, %s1512_s28, %s1513_s29  }
  0x16   :  { %s1514_s17 = smov [#allocation8]   ;;  %s1515_s20 = smov [#allocation2]  }
  0x17   :  { %s80_s18 = sshll.u32 %s1514_s17, 4  ;;  %s34_s21 = sshll.u32 %s1515_s20, 4  ;;  %s81_s18 = int_to_ptr.vmem [resolvable:$true] %s80_s18  ;;  %s35_s21 = int_to_ptr.vmem [resolvable:$true] %s34_s21 }
  0x18   :  { %s1393_s24 = scalar_lea.hbm %s1768_s10, 2048 }
  0x19   :  { %p1394_p8 = scmp.ne.s32.totalorder %s1768_s10, %s1393_s24  ;;  %p1397_p9 = scmp.lt.u32.totalorder %s1393_s24, %s1768_s10 }
  0x1b   :  { %p1399_p10 = pnand %p1397_p9, %p1394_p8 }
  0x1d   :  { %1402 = shalt.err (!%p1399_p10)
}
  0x1e   :  { %s1403_s4 = scalar_lea.vmem %s81_s18, 2048  ;;  %p1408_p12 = scmp.lt.s32.totalorder %s81_s18, %s81_s18 }
  0x1f   :  { %p1404_p11 = scmp.ne.s32.totalorder %s81_s18, %s1403_s4  ;;  %p1409_p13 = scmp.lt.s32.totalorder %s1403_s4, %s1403_s4 }
  0x21   :  { %p1410_p0 = por %p1409_p13, %p1408_p12 }
  0x23   :  { %p1411_p1 = pnand %p1410_p0, %p1404_p11 }
  0x25   :  { %1414 = shalt.err (!%p1411_p1)
}
  0x26   :  { %s1516_s19 = smov 128   ;;  %s1517_s30 = smov 8  }
  0x27   :  { %86 = dma.hbm_to_vmem [thread:$0]  %s1768_s10, 2048, %s81_s18, [#allocation9], %s1516_s19, %s1516_s19, %s1517_s30  }
  0x28   :  { %s1415_s22 = scalar_lea.hbm %s1760_s2, 2048 }
  0x29   :  { %p1416_p2 = scmp.ne.s32.totalorder %s1760_s2, %s1415_s22  ;;  %p1419_p3 = scmp.lt.u32.totalorder %s1415_s22, %s1760_s2 }
  0x2b   :  { %p1421_p4 = pnand %p1419_p3, %p1416_p2 }
  0x2d   :  { %1424 = shalt.err (!%p1421_p4)
}
  0x2e   :  { %s1425_s27 = scalar_lea.vmem %s35_s21, 2048  ;;  %p1430_p6 = scmp.lt.s32.totalorder %s35_s21, %s35_s21 }
  0x2f   :  { %p1426_p5 = scmp.ne.s32.totalorder %s35_s21, %s1425_s27  ;;  %p1431_p7 = scmp.lt.s32.totalorder %s1425_s27, %s1425_s27 }
  0x31   :  { %p1432_p8 = por %p1431_p7, %p1430_p6 }
  0x33   :  { %p1433_p9 = pnand %p1432_p8, %p1426_p5 }
  0x35   :  { %1436 = shalt.err (!%p1433_p9)
}
  0x36   :  { %40 = dma.hbm_to_vmem [thread:$0]  %s1760_s2, 2048, %s35_s21, [#allocation3], %s1516_s19, %s1516_s19, %s1517_s30  }
  0x37   :  { %s1518_s4 = smov [#allocation7]   ;;  %s1519_s17 = smov [#allocation10]  }
  0x38   :  { %s62_s16 = sshll.u32 %s1518_s4, 4  ;;  %s94_s14 = sshll.u32 %s1519_s17, 4  ;;  %s63_s16 = int_to_ptr.vmem [resolvable:$true] %s62_s16  ;;  %s95_s14 = int_to_ptr.vmem [resolvable:$true] %s94_s14 }
  0x39   :  { %s1437_s23 = scalar_lea.hbm %s1764_s6, 2048 }
  0x3a   :  { %p1438_p10 = scmp.ne.s32.totalorder %s1764_s6, %s1437_s23  ;;  %p1441_p11 = scmp.lt.u32.totalorder %s1437_s23, %s1764_s6 }
  0x3c   :  { %p1443_p12 = pnand %p1441_p11, %p1438_p10 }
  0x3e   :  { %1446 = shalt.err (!%p1443_p12)
}
  0x3f   :  { %s1447_s2 = scalar_lea.vmem %s63_s16, 2048  ;;  %p1452_p0 = scmp.lt.s32.totalorder %s63_s16, %s63_s16 }
  0x40   :  { %p1448_p13 = scmp.ne.s32.totalorder %s63_s16, %s1447_s2  ;;  %p1453_p1 = scmp.lt.s32.totalorder %s1447_s2, %s1447_s2 }
  0x42   :  { %p1454_p2 = por %p1453_p1, %p1452_p0 }
  0x44   :  { %p1455_p3 = pnand %p1454_p2, %p1448_p13 }
  0x46   :  { %1458 = shalt.err (!%p1455_p3)
}
  0x47   :  { %68 = dma.hbm_to_vmem [thread:$0]  %s1764_s6, 2048, %s63_s16, [#allocation6], %s1516_s19, %s1516_s19, %s1517_s30  }
  0x48   :  { %s1459_s17 = scalar_lea.hbm %s1770_s12, 2048 }
  0x49   :  { %p1460_p4 = scmp.ne.s32.totalorder %s1770_s12, %s1459_s17  ;;  %p1463_p5 = scmp.lt.u32.totalorder %s1459_s17, %s1770_s12 }
  0x4b   :  { %p1465_p6 = pnand %p1463_p5, %p1460_p4 }
  0x4d   :  { %1468 = shalt.err (!%p1465_p6)
}
  0x4e   :  { %s1469_s25 = scalar_lea.vmem %s95_s14, 2048  ;;  %p1474_p8 = scmp.lt.s32.totalorder %s95_s14, %s95_s14 }
  0x4f   :  { %p1470_p7 = scmp.ne.s32.totalorder %s95_s14, %s1469_s25  ;;  %p1475_p9 = scmp.lt.s32.totalorder %s1469_s25, %s1469_s25 }
  0x51   :  { %p1476_p10 = por %p1475_p9, %p1474_p8 }
  0x53   :  { %p1477_p11 = pnand %p1476_p10, %p1470_p7 }
  0x55   :  { %1480 = shalt.err (!%p1477_p11)
}
  0x56   :  { %100 = dma.hbm_to_vmem [thread:$0]  %s1770_s12, 2048, %s95_s14, [#allocation9], %s1512_s28, %s1512_s28, %s1513_s29  }
  0x57   :  { %1503 = dma.done.wait [#allocation3], 2048  }
  0x58   :  { %1504 = vsyncadd [#allocation3], 4294965248 }
  0x59   :  { %1505 = dma.done.wait [#allocation6], 4096  }
  0x5a   :  { %1506 = vsyncadd [#allocation6], 4294963200 }
  0x5b   :  { %1507 = dma.done.wait [#allocation9], 4096  }
  0x5c   :  { %1508 = vsyncadd [#allocation9], 4294963200  ;;  %v1520_v0 = vmov 0   ;;  %v1253_v1 = vld [vmem:[#allocation2 + $0x4] ss:$8 sps:$4 sm:$0xff]   ;;  %v1281_v15 = vld [vmem:[#allocation5 + $0x50] sm:$0xff]   ;;  %v138_v46 = vlaneseq }
  0x5d   :  { %260 = vmatprep.mubr.bf16.mxu0 %v1520_v0  ;;  %v1255_v2 = vld [vmem:[#allocation2] ss:$8 sps:$4 sm:$0xff]   ;;  %228 = vmatprep.subr.bf16.mxu0 %v1253_v1  ;;  %v1256_v3 = vld [vmem:[#allocation2 + $0x14] ss:$8 sps:$4 sm:$0xff]   ;;  %v1258_v4 = vld [vmem:[#allocation2 + $0x10] ss:$8 sps:$4 sm:$0xff]  }
  0x5e   :  { %229 = vmatpush1.bf16.msra.mxu0 %v1255_v2  ;;  %v1259_v5 = vld [vmem:[#allocation2 + $0x24] ss:$8 sps:$4 sm:$0xff]   ;;  %v1261_v6 = vld [vmem:[#allocation2 + $0x20] ss:$8 sps:$4 sm:$0xff]   ;;  %v1262_v7 = vld [vmem:[#allocation2 + $0x34] ss:$8 sps:$4 sm:$0xff]  }
  0x5f   :  { %230 = vmatprep.subr.bf16.mxu0 %v1256_v3  ;;  %v1264_v8 = vld [vmem:[#allocation2 + $0x30] ss:$8 sps:$4 sm:$0xff]   ;;  %v1265_v9 = vld [vmem:[#allocation2 + $0x44] ss:$8 sps:$4 sm:$0xff]   ;;  %v1267_v12 = vld [vmem:[#allocation2 + $0x40] ss:$8 sps:$4 sm:$0xff]  }
  0x60   :  { %v1277_v10 = vld [vmem:[#allocation5 + $0x40] sm:$0xff]   ;;  %v1279_v13 = vld [vmem:[#allocation5 + $0x48] sm:$0xff]   ;;  %v1268_v16 = vld [vmem:[#allocation2 + $0x54] ss:$8 sps:$4 sm:$0xff]   ;;  %v139_v47 = vshrl.u32 %v138_v46, 7  ;;  %vm1522_vm0 = vmmov 0  }
  0x61   :  { %v1278_v11 = vld [vmem:[#allocation5] sm:$0xff]   ;;  %1167 = vmatprep.subr.bf16.mxu1 %v1277_v10  ;;  %v1280_v14 = vld [vmem:[#allocation5 + $0x8] sm:$0xff]   ;;  %v1270_v17 = vld [vmem:[#allocation2 + $0x50] ss:$8 sps:$4 sm:$0xff]  }
  0x62   :  { %231 = vmatpush1.bf16.msra.mxu0 %v1258_v4  ;;  %1168 = vmatpush3.bf16.msra.mxu1 %v1278_v11  ;;  %v1282_v18 = vld [vmem:[#allocation5 + $0x10] sm:$0xff]   ;;  %v1283_v19 = vld [vmem:[#allocation5 + $0x58] sm:$0xff]   ;;  %v1271_v20 = vld [vmem:[#allocation2 + $0x64] ss:$8 sps:$4 sm:$0xff]   ;;  %v1684_v48 = vsub.s32 0, %v139_v47  ;;  %v1689_v50 = vsub.s32 1, %v139_v47 }
  0x63   :  { %232 = vmatprep.subr.bf16.mxu0 %v1259_v5  ;;  %1169 = vmatprep.subr.bf16.mxu1 %v1279_v13  ;;  %v1273_v21 = vld [vmem:[#allocation2 + $0x60] ss:$8 sps:$4 sm:$0xff]   ;;  %v1274_v22 = vld [vmem:[#allocation2 + $0x74] ss:$8 sps:$4 sm:$0xff]   ;;  %v1276_v26 = vld [vmem:[#allocation2 + $0x70] ss:$8 sps:$4 sm:$0xff]  }
  0x64   :  { %v1284_v23 = vld [vmem:[#allocation5 + $0x18] sm:$0xff]   ;;  %v1285_v24 = vld [vmem:[#allocation5 + $0x60] sm:$0xff]   ;;  %v1287_v27 = vld [vmem:[#allocation5 + $0x68] sm:$0xff]   ;;  %v1521_v5 = vmov 0.0  }
  0x65   :  { %v1286_v25 = vld [vmem:[#allocation5 + $0x20] sm:$0xff]   ;;  %v1288_v28 = vld [vmem:[#allocation5 + $0x28] sm:$0xff]   ;;  %v1289_v30 = vld [vmem:[#allocation5 + $0x70] sm:$0xff]  }
  0x66   :  { %233 = vmatpush1.bf16.msra.mxu0 %v1261_v6  ;;  %1170 = vmatpush3.bf16.msra.mxu1 %v1280_v14  ;;  %v119_v29 = vld [vmem:[%s1758_s0] sm:$0xf]  ;;  %v1290_v31 = vld [vmem:[#allocation5 + $0x30] sm:$0xff]   ;;  %v1291_v32 = vld [vmem:[#allocation5 + $0x78] sm:$0xff]  }
  0x67   :  { %234 = vmatprep.subr.bf16.mxu0 %v1262_v7  ;;  %1171 = vmatprep.subr.bf16.mxu1 %v1281_v15  ;;  %v1292_v33 = vld [vmem:[#allocation5 + $0x38] sm:$0xff]   ;;  %v1293_v34 = vld [vmem:[#allocation7] ss:$8 sps:$4 sm:$0xff]   ;;  %v1295_v35 = vld [vmem:[#allocation7 + $0x4] ss:$8 sps:$4 sm:$0xff]  }
  0x68   :  { %v1298_v36 = vld [vmem:[#allocation7 + $0x14] ss:$8 sps:$4 sm:$0xff]   ;;  %v1296_v37 = vld [vmem:[#allocation7 + $0x10] ss:$8 sps:$4 sm:$0xff]   ;;  %v1301_v38 = vld [vmem:[#allocation7 + $0x24] ss:$8 sps:$4 sm:$0xff]  }
  0x69   :  { %v1299_v39 = vld [vmem:[#allocation7 + $0x20] ss:$8 sps:$4 sm:$0xff]   ;;  %v1304_v40 = vld [vmem:[#allocation7 + $0x34] ss:$8 sps:$4 sm:$0xff]   ;;  %v1302_v41 = vld [vmem:[#allocation7 + $0x30] ss:$8 sps:$4 sm:$0xff]  }
  0x6a   :  { %235 = vmatpush1.bf16.msra.mxu0 %v1264_v8  ;;  %1172 = vmatpush3.bf16.msra.mxu1 %v1282_v18  ;;  %v1307_v42 = vld [vmem:[#allocation7 + $0x44] ss:$8 sps:$4 sm:$0xff]   ;;  %v1305_v43 = vld [vmem:[#allocation7 + $0x40] ss:$8 sps:$4 sm:$0xff]   ;;  %v1310_v44 = vld [vmem:[#allocation7 + $0x54] ss:$8 sps:$4 sm:$0xff]  }
  0x6b   :  { %236 = vmatprep.subr.bf16.mxu0 %v1265_v9  ;;  %1173 = vmatprep.subr.bf16.mxu1 %v1283_v19  ;;  %v1308_v45 = vld [vmem:[#allocation7 + $0x50] ss:$8 sps:$4 sm:$0xff]   ;;  %v136_v49 = vld [vmem:[%s1761_s3] sm:$0x3]  ;;  %v1313_v63 = vld [vmem:[#allocation7 + $0x64] ss:$8 sps:$4 sm:$0xff]  }
  0x6c   :  { %v141_v51 = vrot.slane %v136_v49, %v1684_v48  ;;  %v145_v52 = vrot.slane %v136_v49, %v1689_v50  ;;  %v1311_v1 = vld [vmem:[#allocation7 + $0x60] ss:$8 sps:$4 sm:$0xff]   ;;  %v1316_v2 = vld [vmem:[#allocation7 + $0x74] ss:$8 sps:$4 sm:$0xff]   ;;  %v1314_v3 = vld [vmem:[#allocation7 + $0x70] ss:$8 sps:$4 sm:$0xff]  }
  0x6d   :  { %v1317_v4 = vld [vmem:[%s1766_s8] sm:$0xff]   ;;  %v1318_v6 = vld [vmem:[%s1766_s8 + $0x8] sm:$0xff]   ;;  %v1323_v19 = vld [vmem:[%s1766_s8 + $0x30] sm:$0xff]  }
  0x6e   :  { %237 = vmatpush1.bf16.msra.mxu0 %v1267_v12  ;;  %1174 = vmatpush3.bf16.msra.mxu1 %v1284_v23  ;;  %v1092_v8 = vld [vmem:[%s1763_s5] ss:$0 sm:$0xff]  ;;  %v1330_v23 = vld [vmem:[#allocation8 + $0x14] ss:$8 sps:$4 sm:$0xff]  }
  0x6f   :  { %238 = vmatprep.subr.bf16.mxu0 %v1268_v16  ;;  %1175 = vmatprep.subr.bf16.mxu1 %v1285_v24  ;;  %v1319_v16 = vld [vmem:[%s1766_s8 + $0x10] sm:$0xff]   ;;  %v1321_v18 = vld [vmem:[%s1766_s8 + $0x20] sm:$0xff]  }
  0x70   :  { %v1328_v24 = vld [vmem:[#allocation8 + $0x10] ss:$8 sps:$4 sm:$0xff]   ;;  %v599_v46 = vld [vmem:[%s1759_s1] sm:$0xff] }
  0x72   :  { %239 = vmatpush1.bf16.msra.mxu0 %v1270_v17  ;;  %1176 = vmatpush3.bf16.msra.mxu1 %v1286_v25  ;;  %v1320_v17 = vld [vmem:[%s1766_s8 + $0x18] sm:$0xff]   ;;  %v1333_v25 = vld [vmem:[#allocation8 + $0x24] ss:$8 sps:$4 sm:$0xff]  }
  0x73   :  { %240 = vmatprep.subr.bf16.mxu0 %v1271_v20  ;;  %1177 = vmatprep.subr.bf16.mxu1 %v1287_v27  ;;  %v1324_v20 = vld [vmem:[%s1766_s8 + $0x38] sm:$0xff]  }
  0x74   :  { %v1336_v27 = vld [vmem:[#allocation8 + $0x34] ss:$8 sps:$4 sm:$0xff]  }
  0x76   :  { %241 = vmatpush1.bf16.msra.mxu0 %v1273_v21  ;;  %1178 = vmatpush3.bf16.msra.mxu1 %v1288_v28  ;;  %v1325_v21 = vld [vmem:[#allocation8] ss:$8 sps:$4 sm:$0xff]   ;;  %v1334_v28 = vld [vmem:[#allocation8 + $0x30] ss:$8 sps:$4 sm:$0xff]  }
  0x77   :  { %242 = vmatprep.subr.bf16.mxu0 %v1274_v22  ;;  %1179 = vmatprep.subr.bf16.mxu1 %v1289_v30  ;;  %v1327_v22 = vld [vmem:[#allocation8 + $0x4] ss:$8 sps:$4 sm:$0xff]   ;;  %v1337_v30 = vld [vmem:[#allocation8 + $0x40] ss:$8 sps:$4 sm:$0xff]  }
  0x7a   :  { %243 = vmatpush1.bf16.msra.mxu0 %v1276_v26  ;;  %1180 = vmatpush3.bf16.msra.mxu1 %v1290_v31  ;;  %v1331_v26 = vld [vmem:[#allocation8 + $0x20] ss:$8 sps:$4 sm:$0xff]   ;;  %v1342_v31 = vld [vmem:[#allocation8 + $0x54] ss:$8 sps:$4 sm:$0xff]  }
  0x7b   :  { %1181 = vmatprep.subr.bf16.mxu1 %v1291_v32  ;;  %558 = vmatprep.subr.bf16.mxu0 %v1295_v35  ;;  %v1340_v32 = vld [vmem:[#allocation8 + $0x50] ss:$8 sps:$4 sm:$0xff]   ;;  %v466_v35 = vld [vmem:[%s1765_s7] sm:$0x3] }
  0x7d   :  { %261 = vmatmul.mubr.bf16.vlgmr.msra.gmra.mrb[0].mxu0 %v119_v29  ;;  %v1339_v29 = vld [vmem:[#allocation8 + $0x44] ss:$8 sps:$4 sm:$0xff]  }
  0x7e   :  { %590 = vmatprep.mubr.bf16.mxu0 %v1520_v0  ;;  %1182 = vmatpush3.bf16.msra.mxu1 %v1292_v33  ;;  %v1345_v33 = vld [vmem:[#allocation8 + $0x64] ss:$8 sps:$4 sm:$0xff]  }
  0x7f   :  { %559 = vmatpush1.bf16.msra.mxu0 %v1293_v34  ;;  %1220 = vmatprep.subr.bf16.mxu1 %v1521_v5  ;;  %v1343_v34 = vld [vmem:[#allocation8 + $0x60] ss:$8 sps:$4 sm:$0xff]  }
  0x80   :  { %560 = vmatprep.subr.bf16.mxu0 %v1298_v36  ;;  %v471_v36 = vrot.slane %v466_v35, %v1684_v48 }
  0x83   :  { %561 = vmatpush1.bf16.msra.mxu0 %v1296_v37  ;;  %v475_v37 = vrot.slane %v466_v35, %v1689_v50 }
  0x84   :  { %562 = vmatprep.subr.bf16.mxu0 %v1301_v38 }
  0x87   :  { %563 = vmatpush1.bf16.msra.mxu0 %v1299_v39 }
  0x88   :  { %564 = vmatprep.subr.bf16.mxu0 %v1304_v40 }
  0x8b   :  { %565 = vmatpush1.bf16.msra.mxu0 %v1302_v41 }
  0x8c   :  { %566 = vmatprep.subr.bf16.mxu0 %v1307_v42 }
  0x8f   :  { %567 = vmatpush1.bf16.msra.mxu0 %v1305_v43 }
  0x90   :  { %568 = vmatprep.subr.bf16.mxu0 %v1310_v44 }
  0x93   :  { %569 = vmatpush1.bf16.msra.mxu0 %v1308_v45 }
  0x94   :  { %570 = vmatprep.subr.bf16.mxu0 %v1313_v63  ;;  %v1357_v63 = vld [vmem:[#allocation10 + $0x60] sm:$0xff]  }
  0x97   :  { %571 = vmatpush1.bf16.msra.mxu0 %v1311_v1  ;;  %v1358_v1 = vld [vmem:[#allocation10 + $0x20] sm:$0xff]  }
  0x98   :  { %572 = vmatprep.subr.bf16.mxu0 %v1316_v2  ;;  %v1359_v2 = vld [vmem:[#allocation10 + $0x68] sm:$0xff]  }
  0x9b   :  { %573 = vmatpush1.bf16.msra.mxu0 %v1314_v3  ;;  %v1360_v3 = vld [vmem:[#allocation10 + $0x28] sm:$0xff]  }
  0x9c   :  { %827 = vmatprep.subr.bf16.mxu0 %v1327_v22 }
 0x150   :  { %v262_v53 = vpop.f32.mrb[0].mxu0 }
 0x151   :  { %v263_v54 = vadd.f32 %v262_v53, %v141_v51  ;;  %v264_v55 = vpop.f32.mrb[1].mxu0  ;;  %v1348_v53 = vld [vmem:[#allocation8 + $0x74] ss:$8 sps:$4 sm:$0xff]  }
 0x152   :  { %v265_v56 = vadd.f32 %v264_v55, %v145_v52  ;;  %v266_v57 = vpop.f32.mrb[2].mxu0  ;;  %v1349_v55 = vld [vmem:[#allocation10 + $0x40] sm:$0xff]  }
 0x153   :  { %v269_v58 = vmax.f32 %v263_v54, 0.0  ;;  %v267_v59 = vpop.f32.mrb[3].mxu0  ;;  %v1346_v54 = vld [vmem:[#allocation8 + $0x70] ss:$8 sps:$4 sm:$0xff]   ;;  %v1351_v57 = vld [vmem:[#allocation10 + $0x48] sm:$0xff]  }
 0x154   :  { %v270_v60 = vmax.f32 %v265_v56, 0.0  ;;  %v1350_v56 = vld [vmem:[#allocation10] sm:$0xff]   ;;  %v1353_v59 = vld [vmem:[#allocation10 + $0x50] sm:$0xff]  }
 0x155   :  { %v271_v62 = vpack.c.bf16 %v269_v58, %v269_v58  ;;  %v1352_v58 = vld [vmem:[#allocation10 + $0x8] sm:$0xff]  }
 0x156   :  { %v272_v61 = vpack.c.bf16 %v270_v60, %v270_v60  ;;  %v1354_v60 = vld [vmem:[#allocation10 + $0x10] sm:$0xff]  }
 0x158   :  { %440 = vmatprep.mubr.bf16.mxu1 %v272_v61  ;;  %v1355_v61 = vld [vmem:[#allocation10 + $0x58] sm:$0xff]  }
 0x159   :  { %441 = vmatmul.mubr.bf16.vlgmr.msra.gmra.mrb[0].mxu1 %v271_v62  ;;  %v1356_v62 = vld [vmem:[#allocation10 + $0x18] sm:$0xff]  }
 0x15a   :  { %1221 = vmatpush3.bf16.msra.mxu1 %v1317_v4  ;;  %1236 = vmatprep.mubr.msk.bf16.mxu1 %vm1522_vm0, %v1521_v5  ;;  %v1125_v4 = vld [vmem:[%s1767_s9] ss:$0 sm:$0xff] }
 0x15b   :  { %1222 = vmatprep.subr.bf16.mxu1 %v1521_v5 }
 0x15e   :  { %1223 = vmatpush3.bf16.msra.mxu1 %v1318_v6 }
 0x15f   :  { %1224 = vmatprep.subr.bf16.mxu1 %v1521_v5 }
 0x162   :  { %1225 = vmatpush3.bf16.msra.mxu1 %v1319_v16  ;;  %v735_v16 = vld [vmem:[%s1769_s11] sm:$0x3]  ;;  %s1523_s11 = smov [#allocation11]  }
 0x163   :  { %1226 = vmatprep.subr.bf16.mxu1 %v1521_v5  ;;  %s1061_s14 = sshll.u32 %s1523_s11, 4  ;;  %s1062_s14 = int_to_ptr.vmem [resolvable:$true] %s1061_s14 }
 0x164   :  { %s1481_s26 = scalar_lea.vmem %s1062_s14, 128  ;;  %p1486_p13 = scmp.lt.s32.totalorder %s1062_s14, %s1062_s14 }
 0x165   :  { %p1482_p12 = scmp.ne.s32.totalorder %s1062_s14, %s1481_s26  ;;  %p1487_p0 = scmp.lt.s32.totalorder %s1481_s26, %s1481_s26 }
 0x166   :  { %1227 = vmatpush3.bf16.msra.mxu1 %v1320_v17  ;;  %v740_v17 = vrot.slane %v735_v16, %v1684_v48 }
 0x167   :  { %1228 = vmatprep.subr.bf16.mxu1 %v1521_v5  ;;  %p1488_p1 = por %p1487_p0, %p1486_p13 }
 0x169   :  { %p1489_p2 = pnand %p1488_p1, %p1482_p12 }
 0x16a   :  { %1229 = vmatpush3.bf16.msra.mxu1 %v1321_v18  ;;  %v744_v18 = vrot.slane %v735_v16, %v1689_v50 }
 0x16b   :  { %1230 = vmatprep.subr.bf16.mxu1 %v1521_v5 }
 0x22c   :  { %v1183_v7 = vpop.f32.mrb[0].mxu1 }
 0x22d   :  { %v1184_v9 = vpop.f32.mrb[1].mxu1 }
 0x22e   :  { %v1185_v10 = vadd.f32 %v1184_v9, %v1183_v7  ;;  %v1186_v11 = vpop.f32.mrb[2].mxu1 }
 0x22f   :  { %v1187_v12 = vpop.f32.mrb[3].mxu1 }
 0x230   :  { %v443_v13 = vadd.f32 %v1185_v10, %v1092_v8  ;;  %v1361_v12 = vld [vmem:[#allocation10 + $0x70] sm:$0xff]  }
 0x232   :  { %v448_v14 = vmax.f32 %v443_v13, 0.0  ;;  %v1362_v13 = vld [vmem:[#allocation10 + $0x30] sm:$0xff]  }
 0x234   :  { %v449_v15 = vpack.c.bf16 %v448_v14, %v448_v14  ;;  %v1363_v14 = vld [vmem:[#allocation10 + $0x78] sm:$0xff]  }
 0x236   :  { %591 = vmatmul.mubr.bf16.vlgmr.msra.gmra.mrb[4].mxu0 %v449_v15  ;;  %v1364_v15 = vld [vmem:[#allocation10 + $0x38] sm:$0xff]  }
 0x237   :  { %859 = vmatprep.mubr.bf16.mxu0 %v1520_v0  ;;  %v1322_v0 = vld [vmem:[%s1766_s8 + $0x28] sm:$0xff]   ;;  %828 = vmatpush1.bf16.msra.mxu0 %v1325_v21 }
 0x238   :  { %1231 = vmatpush3.bf16.msra.mxu1 %v1322_v0  ;;  %829 = vmatprep.subr.bf16.mxu0 %v1330_v23 }
 0x239   :  { %1232 = vmatprep.subr.bf16.mxu1 %v1521_v5 }
 0x23b   :  { %830 = vmatpush1.bf16.msra.mxu0 %v1328_v24 }
 0x23c   :  { %1233 = vmatpush3.bf16.msra.mxu1 %v1323_v19  ;;  %831 = vmatprep.subr.bf16.mxu0 %v1333_v25 }
 0x23d   :  { %1234 = vmatprep.subr.bf16.mxu1 %v1521_v5 }
 0x23f   :  { %832 = vmatpush1.bf16.msra.mxu0 %v1331_v26 }
 0x240   :  { %1235 = vmatpush3.bf16.msra.mxu1 %v1324_v20  ;;  %833 = vmatprep.subr.bf16.mxu0 %v1336_v27 }
 0x241   :  { %1198 = vmatprep.subr.bf16.mxu1 %v1349_v55 }
 0x243   :  { %834 = vmatpush1.bf16.msra.mxu0 %v1334_v28 }
 0x244   :  { %835 = vmatprep.subr.bf16.mxu0 %v1339_v29  ;;  %v1150_v29 = vld [vmem:[%s1771_s13] ss:$0 sm:$0xff] }
 0x247   :  { %836 = vmatpush1.bf16.msra.mxu0 %v1337_v30 }
 0x248   :  { %837 = vmatprep.subr.bf16.mxu0 %v1342_v31 }
 0x24b   :  { %838 = vmatpush1.bf16.msra.mxu0 %v1340_v32 }
 0x24c   :  { %839 = vmatprep.subr.bf16.mxu0 %v1345_v33 }
 0x24f   :  { %840 = vmatpush1.bf16.msra.mxu0 %v1343_v34 }
 0x250   :  { %841 = vmatprep.subr.bf16.mxu0 %v1348_v53 }
 0x253   :  { %842 = vmatpush1.bf16.msra.mxu0 %v1346_v54 }
 0x309   :  { %v592_v38 = vpop.f32.mrb[4].mxu0 }
 0x30a   :  { %v593_v39 = vadd.f32 %v592_v38, %v471_v36  ;;  %v594_v40 = vpop.f32.mrb[5].mxu0 }
 0x30b   :  { %v595_v41 = vadd.f32 %v594_v40, %v475_v37  ;;  %v596_v42 = vpop.f32.mrb[6].mxu0 }
 0x30c   :  { %1053 = vst [vmem:[%s1773_s15] sm:$0xff] %v593_v39  ;;  %v597_v43 = vpop.f32.mrb[7].mxu0 }
 0x30d   :  { %v600_v44 = vmul.f32 0.5, %v595_v41  ;;  %1054 = vst [vmem:[%s1773_s15 + $0x8] sm:$0xff] %v595_v41 }
 0x30f   :  { %v601_v45 = vmul.f32 1.442695, %v600_v44 }
 0x311   :  { %1365 = vpow2.f32 %v601_v45 }
 0x31b   :  { %v1366_v47 = vpop.eup %1365 }
 0x31c   :  { %v603_v49 = vmul.f32 %v1366_v47, %v599_v46 }
 0x31e   :  { %v604_v51 = vadd.f32 %v603_v49, %v593_v39 }
 0x320   :  { %v605_v52 = vpack.c.bf16 %v604_v51, %v604_v51 }
 0x322   :  { %1237 = vmatmul.mubr.bf16.vlgmr.msra.gmra.mrb[4].mxu1 %v605_v52 }
 0x323   :  { %1199 = vmatpush3.bf16.msra.mxu1 %v1350_v56 }
 0x324   :  { %1200 = vmatprep.subr.bf16.mxu1 %v1351_v57 }
 0x327   :  { %1201 = vmatpush3.bf16.msra.mxu1 %v1352_v58 }
 0x328   :  { %1202 = vmatprep.subr.bf16.mxu1 %v1353_v59 }
 0x32b   :  { %1203 = vmatpush3.bf16.msra.mxu1 %v1354_v60 }
 0x32c   :  { %1204 = vmatprep.subr.bf16.mxu1 %v1355_v61 }
 0x32f   :  { %1205 = vmatpush3.bf16.msra.mxu1 %v1356_v62 }
 0x330   :  { %1206 = vmatprep.subr.bf16.mxu1 %v1357_v63 }
 0x333   :  { %1207 = vmatpush3.bf16.msra.mxu1 %v1358_v1 }
 0x334   :  { %1208 = vmatprep.subr.bf16.mxu1 %v1359_v2 }
 0x337   :  { %1209 = vmatpush3.bf16.msra.mxu1 %v1360_v3 }
 0x338   :  { %1210 = vmatprep.subr.bf16.mxu1 %v1361_v12 }
 0x33b   :  { %1211 = vmatpush3.bf16.msra.mxu1 %v1362_v13 }
 0x33c   :  { %1212 = vmatprep.subr.bf16.mxu1 %v1363_v14 }
 0x33f   :  { %1213 = vmatpush3.bf16.msra.mxu1 %v1364_v15 }
 0x3f5   :  { %v711_v5 = vpop.f32.mrb[4].mxu1 }
 0x3f6   :  { %v712_v6 = vadd.f32 %v1125_v4, %v711_v5  ;;  %v1238_v7 = vpop.f32.mrb[5].mxu1 }
 0x3f7   :  { %v714_v8 = vpop.f32.mrb[6].mxu1 }
 0x3f8   :  { %v717_v9 = vmax.f32 %v712_v6, 0.0  ;;  %v1239_v10 = vpop.f32.mrb[7].mxu1 }
 0x3fa   :  { %v718_v11 = vpack.c.bf16 %v717_v9, %v717_v9 }
 0x3fc   :  { %860 = vmatmul.mubr.bf16.vlgmr.msra.gmra.mrb[8].mxu0 %v718_v11 }
 0x4cf   :  { %v861_v0 = vpop.f32.mrb[8].mxu0 }
 0x4d0   :  { %v862_v19 = vadd.f32 %v861_v0, %v740_v17  ;;  %v863_v20 = vpop.f32.mrb[9].mxu0 }
 0x4d1   :  { %v864_v21 = vadd.f32 %v863_v20, %v744_v18  ;;  %v865_v22 = vpop.f32.mrb[10].mxu0 }
 0x4d2   :  { %v868_v23 = vmax.f32 %v862_v19, 0.0  ;;  %v866_v24 = vpop.f32.mrb[11].mxu0 }
 0x4d3   :  { %v869_v25 = vmax.f32 %v864_v21, 0.0 }
 0x4d4   :  { %v870_v27 = vpack.c.bf16 %v868_v23, %v868_v23 }
 0x4d5   :  { %v871_v26 = vpack.c.bf16 %v869_v25, %v869_v25 }
 0x4d7   :  { %1039 = vmatprep.mubr.bf16.mxu1 %v871_v26 }
 0x4d8   :  { %1040 = vmatmul.mubr.bf16.vlgmr.msra.gmra.mrb[8].mxu1 %v870_v27 }
 0x5ab   :  { %v1214_v28 = vpop.f32.mrb[8].mxu1 }
 0x5ac   :  { %v1215_v48 = vpop.f32.mrb[9].mxu1 }
 0x5ad   :  { %v1216_v30 = vadd.f32 %v1215_v48, %v1214_v28  ;;  %v1217_v50 = vpop.f32.mrb[10].mxu1 }
 0x5ae   :  { %v1218_v31 = vpop.f32.mrb[11].mxu1 }
 0x5af   :  { %v1042_v32 = vadd.f32 %v1216_v30, %v1150_v29 }
 0x5b1   :  { %v1047_v33 = vsub.f32 0.0, %v1042_v32 }
 0x5b3   :  { %v1048_v34 = vmul.f32 1.442695, %v1047_v33 }
 0x5b5   :  { %1367 = vpow2.f32 %v1048_v34 }
 0x5bf   :  { %v1368_v35 = vpop.eup %1367 }
 0x5c0   :  { %v1050_v36 = vadd.f32 1.0, %v1368_v35 }
 0x5c2   :  { %1369 = vrcp.f32 %v1050_v36 }
 0x5cc   :  { %v1370_v37 = vpop.eup %1369 }
 0x5cd   :  { %1052 = vst [vmem:[#allocation11] sm:$0xff] %v1370_v37 }
 0x5ce   :  { %1492 = shalt.err (!%p1489_p2)
}
 0x5cf   :  { %s1776_s2 = sld [smem:[#allocation16_spill]] }
 0x5d5   :  { %s1493_s21 = scalar_lea.hbm %s1776_s2, 128 }
 0x5d6   :  { %p1494_p3 = scmp.ne.s32.totalorder %s1776_s2, %s1493_s21  ;;  %p1497_p4 = scmp.lt.u32.totalorder %s1493_s21, %s1776_s2 }
 0x5d8   :  { %p1499_p5 = pnand %p1497_p4, %p1494_p3 }
 0x5da   :  { %1502 = shalt.err (!%p1499_p5)
}
 0x5db   :  { %1064 = dma.vmem_to_hbm [thread:$0]  %s1062_s14, 128, %s1776_s2, [#allocation4]  }
 0x5dc   :  { %1509 = dma.done.wait [#allocation4], 128  }
 0x5dd   :  { %1510 = vsyncadd [#allocation4], 4294967168 }
 0x5de   :  { %1072 = vsyncpa [#allocation3], 1 }
 0x5df   :  { %1073 = vsyncpa [#allocation6], 1 }
 0x5e0   :  { %1074 = vsyncpa [#allocation9], 1 }
 0x5e1   :  { %1075 = vsyncpa [#allocation4], 1 }

</bundles_post_ra>
